<compile_context>
chip_gen: v5e
topology: v5e:2x2
jax: 0.10.0
libtpu: 0.0.40
codegen_flags: <defaults>
</compile_context>

<pallas_src>
import jax
import jax.numpy as jnp
from jax.experimental import pallas as pl
from jax.experimental.pallas import tpu as pltpu

LANE = 128  # TPU lane width (last-dim tile)
SUB = 8     # TPU sublane width (second-to-last-dim tile)


def _round_up(v, m):
    return ((v + m - 1) // m) * m


def _pad2(m, rows, cols):
    """Zero-pad a 2-D array up to (rows, cols)."""
    out = jnp.zeros((rows, cols), jnp.float32)
    return out.at[: m.shape[0], : m.shape[1]].set(m.astype(jnp.float32))


# ----------------------------- fused Pallas kernel ---------------------------

def fused_gcn_kernel(a_ref, x_ref, w1_ref, b1_ref, w2_ref, b2_ref,
                     w3_ref, b3_ref, p_ref, wl_ref, bl_ref, o_ref):
    """Entire GCN forward in one kernel; everything stays VMEM-resident."""
    # Normalized adjacency in bf16: the A @ h aggregations dominate padded MXU work,
    # bf16 operands + f32 accumulation run at native MXU rate.
    a = a_ref[...].astype(jnp.bfloat16)              # (Np, Np)

    # layer 1: relu(A @ (X @ W1) + b1)                        (Np,16)@(16,64)
    h = jnp.dot(x_ref[...], w1_ref[...], preferred_element_type=jnp.float32)
    h = jnp.dot(a, h.astype(jnp.bfloat16), preferred_element_type=jnp.float32)
    h = jnp.maximum(h + b1_ref[...], 0.0)            # (Np, 64)

    # layer 2: relu(A @ (h @ W2) + b2)                        (Np,64)@(64,128)
    h = jnp.dot(h, w2_ref[...], preferred_element_type=jnp.float32)
    h = jnp.dot(a, h.astype(jnp.bfloat16), preferred_element_type=jnp.float32)
    h = jnp.maximum(h + b2_ref[...], 0.0)            # (Np, 128)

    # layer 3: relu(A @ (h @ W3) + b3)                        (Np,128)@(128,64)
    h = jnp.dot(h, w3_ref[...], preferred_element_type=jnp.float32)
    h = jnp.dot(a, h.astype(jnp.bfloat16), preferred_element_type=jnp.float32)
    h = jnp.maximum(h + b3_ref[...], 0.0)            # (Np, 64)

    # mean-pool then Linear: g = P @ h (Gp,64), y = g @ Wl + bl (Gp,1)
    g = jnp.dot(p_ref[...], h, preferred_element_type=jnp.float32)
    o_ref[...] = jnp.dot(g, wl_ref[...],
                         preferred_element_type=jnp.float32) + bl_ref[...]


# ----------------------------- wrapper ---------------------------------------

def gcn_forward(params, x, edge_index, batch, num_graphs):
    n, f_in = x.shape
    a_hat = normalized_adjacency(edge_index, n)
    pool = mean_pool_matrix(batch, num_graphs, n)

    # Pad ONLY the node dim (lane dim of A_hat / contraction dim) and the graph dim.
    # Feature dims (16/64/128/64/1) stay at their true widths: full-array VMEM blocks
    # don't require 128-lane padding and the MXU then contracts over the real widths.
    n_pad = _round_up(n, LANE)
    g_pad = _round_up(num_graphs, SUB)

    a_p = _pad2(a_hat, n_pad, n_pad)
    x_p = _pad2(x, n_pad, f_in)
    p_p = _pad2(pool, g_pad, n_pad)
    w1 = params["w1"].astype(jnp.float32)
    b1 = params["b1"].astype(jnp.float32)[None, :]
    w2 = params["w2"].astype(jnp.float32)
    b2 = params["b2"].astype(jnp.float32)[None, :]
    w3 = params["w3"].astype(jnp.float32)
    b3 = params["b3"].astype(jnp.float32)[None, :]
    wl = params["w_lin"].astype(jnp.float32)
    bl = params["b_lin"].astype(jnp.float32)[None, :]

    vmem_spec = pl.BlockSpec(memory_space=pltpu.MemorySpace.VMEM)
    out_pad = pl.pallas_call(
        fused_gcn_kernel,
        out_shape=jax.ShapeDtypeStruct((g_pad, 1), jnp.float32),
        in_specs=[vmem_spec] * 11,
        out_specs=vmem_spec,
    )(a_p, x_p, w1, b1, w2, b2, w3, b3, p_p, wl, bl)

    return out_pad[:num_graphs, :]


# ----------------------------- JAX glue (graph prep, params) ------------------

def normalized_adjacency(edge_index, num_nodes):
    """D^{-1/2} (A + I) D^{-1/2}, with A[dst, src] = 1 (source-to-target flow).

    Note: adds I unconditionally; assumes edge_index has no pre-existing self-loops
    (matches PyG gcn_norm for that common case).
    """
    src, dst = edge_index[0], edge_index[1]
    a = jnp.zeros((num_nodes, num_nodes), jnp.float32)
    a = a.at[dst, src].set(1.0)
    a = a + jnp.eye(num_nodes, dtype=jnp.float32)
    deg = a.sum(axis=1)
    d_inv_sqrt = jnp.where(deg > 0, 1.0 / jnp.sqrt(deg), 0.0)
    return d_inv_sqrt[:, None] * a * d_inv_sqrt[None, :]


def mean_pool_matrix(batch, num_graphs, num_nodes):
    """P[g, n] = 1/|V_g| if batch[n] == g else 0, so (P @ H) == global_mean_pool."""
    onehot = (batch[None, :] == jnp.arange(num_graphs)[:, None]).astype(jnp.float32)
    counts = onehot.sum(axis=1, keepdims=True)
    return onehot / jnp.maximum(counts, 1.0)


def glorot(key, shape):
    limit = jnp.sqrt(6.0 / (shape[0] + shape[1]))
    return jax.random.uniform(key, shape, jnp.float32, -limit, limit)


def init_params(key, input_dim):
    ks = jax.random.split(key, 5)
    return {
        "w1": glorot(ks[0], (input_dim, 64)),
        "b1": jnp.zeros((64,), jnp.float32),
        "w2": glorot(ks[1], (64, 128)),
        "b2": jnp.zeros((128,), jnp.float32),
        "w3": glorot(ks[2], (128, 64)),
        "b3": jnp.zeros((64,), jnp.float32),
        "w_lin": glorot(ks[3], (64, 1)),
        "b_lin": jax.random.uniform(ks[4], (1,), jnp.float32,
                                    -1.0 / jnp.sqrt(64.0), 1.0 / jnp.sqrt(64.0)),
    }


def reference_forward(params, x, edge_index, batch, num_graphs):
    """Pure-JAX reference (same math, unpadded) for a correctness check."""
    hp = jax.lax.Precision.HIGHEST
    a_hat = normalized_adjacency(edge_index, x.shape[0])
    pool = mean_pool_matrix(batch, num_graphs, x.shape[0])
    h = jax.nn.relu(jnp.dot(a_hat, jnp.dot(x, params["w1"], precision=hp),
                            precision=hp) + params["b1"])
    h = jax.nn.relu(jnp.dot(a_hat, jnp.dot(h, params["w2"], precision=hp),
                            precision=hp) + params["b2"])
    h = jax.nn.relu(jnp.dot(a_hat, jnp.dot(h, params["w3"], precision=hp),
                            precision=hp) + params["b3"])
    g = jnp.dot(pool, h, precision=hp)
    return jnp.dot(g, params["w_lin"], precision=hp) + params["b_lin"]


# ----------------------------- main --------------------------------

if __name__ == "__main__":
    key = jax.random.PRNGKey(0)
    k_x, k_p = jax.random.split(key)

    input_dim = 16
    num_nodes = 16          # two graphs of 8 nodes each
    num_graphs = 2

    x = jax.random.normal(k_x, (num_nodes, input_dim), jnp.float32)

    # Two symmetric ring graphs: nodes 0-7 (graph 0) and 8-15 (graph 1).
    edges = []
    for g in range(num_graphs):
        base = g * 8
        for i in range(8):
            s = base + i
            t = base + (i + 1) % 8
            edges.append((s, t))
            edges.append((t, s))
    edge_index = jnp.array(edges, jnp.int32).T          # (2, E) = (2, 32)
    batch = jnp.array([0] * 8 + [1] * 8, jnp.int32)     # (N,)

    params = init_params(k_p, input_dim)

    out = gcn_forward(params, x, edge_index, batch, num_graphs)
    out = jax.block_until_ready(out)
    assert out.shape == (num_graphs, 1)
    assert bool(jnp.all(jnp.isfinite(out)))

    ref = jax.block_until_ready(
        reference_forward(params, x, edge_index, batch, num_graphs))
    assert bool(jnp.allclose(out, ref, atol=2e-2, rtol=2e-2))

    print("KERNEL_OK")
</pallas_src>

<mosaic_0001>
module attributes {stable_mosaic.version = 11 : i64} {
  func.func @fused_gcn_kernel(%arg0: memref<128x128xf32, #tpu.memory_space<vmem>>, %arg1: memref<128x16xf32, #tpu.memory_space<vmem>>, %arg2: memref<16x64xf32, #tpu.memory_space<vmem>>, %arg3: memref<1x64xf32, #tpu.memory_space<vmem>>, %arg4: memref<64x128xf32, #tpu.memory_space<vmem>>, %arg5: memref<1x128xf32, #tpu.memory_space<vmem>>, %arg6: memref<128x64xf32, #tpu.memory_space<vmem>>, %arg7: memref<1x64xf32, #tpu.memory_space<vmem>>, %arg8: memref<8x128xf32, #tpu.memory_space<vmem>>, %arg9: memref<64x1xf32, #tpu.memory_space<vmem>>, %arg10: memref<1x1xf32, #tpu.memory_space<vmem>>, %arg11: memref<8x1xf32, #tpu.memory_space<vmem>>) attributes {dimension_semantics = [], scalar_prefetch = 0 : i64, scratch_operands = 0 : i64, tpu.core_type = #tpu.core_type<tc>} {
    %c0 = arith.constant 0 : index
    %c0_0 = arith.constant 0 : index
    %0 = vector.load %arg0[%c0, %c0_0] : memref<128x128xf32, #tpu.memory_space<vmem>>, vector<128x128xf32>
    %1 = arith.truncf %0 : vector<128x128xf32> to vector<128x128xbf16>
    %c0_1 = arith.constant 0 : index
    %c0_2 = arith.constant 0 : index
    %2 = vector.load %arg1[%c0_1, %c0_2] : memref<128x16xf32, #tpu.memory_space<vmem>>, vector<128x16xf32>
    %c0_3 = arith.constant 0 : index
    %c0_4 = arith.constant 0 : index
    %3 = vector.load %arg2[%c0_3, %c0_4] : memref<16x64xf32, #tpu.memory_space<vmem>>, vector<16x64xf32>
    %cst = arith.constant dense<0.000000e+00> : vector<128x64xf32>
    %4 = tpu.matmul %2, %3, %cst {dimension_numbers = #tpu.dot_dimension_numbers<[1], [0], [0], [1], [0, 0, 1, 1], [], []>} : vector<128x16xf32>, vector<16x64xf32>, vector<128x64xf32> -> vector<128x64xf32>
    %5 = arith.truncf %4 : vector<128x64xf32> to vector<128x64xbf16>
    %cst_5 = arith.constant dense<0.000000e+00> : vector<128x64xf32>
    %6 = tpu.matmul %1, %5, %cst_5 {dimension_numbers = #tpu.dot_dimension_numbers<[1], [0], [0], [1], [0, 0, 1, 1], [], []>} : vector<128x128xbf16>, vector<128x64xbf16>, vector<128x64xf32> -> vector<128x64xf32>
    %c0_6 = arith.constant 0 : index
    %c0_7 = arith.constant 0 : index
    %7 = vector.load %arg3[%c0_6, %c0_7] : memref<1x64xf32, #tpu.memory_space<vmem>>, vector<1x64xf32>
    %8 = vector.broadcast %7 : vector<1x64xf32> to vector<128x64xf32>
    %9 = arith.addf %6, %8 : vector<128x64xf32>
    %cst_8 = arith.constant 0.000000e+00 : f32
    %10 = vector.broadcast %cst_8 : f32 to vector<128x64xf32>
    %11 = arith.maximumf %9, %10 : vector<128x64xf32>
    %c0_9 = arith.constant 0 : index
    %c0_10 = arith.constant 0 : index
    %12 = vector.load %arg4[%c0_9, %c0_10] : memref<64x128xf32, #tpu.memory_space<vmem>>, vector<64x128xf32>
    %cst_11 = arith.constant dense<0.000000e+00> : vector<128x128xf32>
    %13 = tpu.matmul %11, %12, %cst_11 {dimension_numbers = #tpu.dot_dimension_numbers<[1], [0], [0], [1], [0, 0, 1, 1], [], []>} : vector<128x64xf32>, vector<64x128xf32>, vector<128x128xf32> -> vector<128x128xf32>
    %14 = arith.truncf %13 : vector<128x128xf32> to vector<128x128xbf16>
    %cst_12 = arith.constant dense<0.000000e+00> : vector<128x128xf32>
    %15 = tpu.matmul %1, %14, %cst_12 {dimension_numbers = #tpu.dot_dimension_numbers<[1], [0], [0], [1], [0, 0, 1, 1], [], []>} : vector<128x128xbf16>, vector<128x128xbf16>, vector<128x128xf32> -> vector<128x128xf32>
    %c0_13 = arith.constant 0 : index
    %c0_14 = arith.constant 0 : index
    %16 = vector.load %arg5[%c0_13, %c0_14] : memref<1x128xf32, #tpu.memory_space<vmem>>, vector<1x128xf32>
    %17 = vector.broadcast %16 : vector<1x128xf32> to vector<128x128xf32>
    %18 = arith.addf %15, %17 : vector<128x128xf32>
    %cst_15 = arith.constant 0.000000e+00 : f32
    %19 = vector.broadcast %cst_15 : f32 to vector<128x128xf32>
    %20 = arith.maximumf %18, %19 : vector<128x128xf32>
    %c0_16 = arith.constant 0 : index
    %c0_17 = arith.constant 0 : index
    %21 = vector.load %arg6[%c0_16, %c0_17] : memref<128x64xf32, #tpu.memory_space<vmem>>, vector<128x64xf32>
    %cst_18 = arith.constant dense<0.000000e+00> : vector<128x64xf32>
    %22 = tpu.matmul %20, %21, %cst_18 {dimension_numbers = #tpu.dot_dimension_numbers<[1], [0], [0], [1], [0, 0, 1, 1], [], []>} : vector<128x128xf32>, vector<128x64xf32>, vector<128x64xf32> -> vector<128x64xf32>
    %23 = arith.truncf %22 : vector<128x64xf32> to vector<128x64xbf16>
    %cst_19 = arith.constant dense<0.000000e+00> : vector<128x64xf32>
    %24 = tpu.matmul %1, %23, %cst_19 {dimension_numbers = #tpu.dot_dimension_numbers<[1], [0], [0], [1], [0, 0, 1, 1], [], []>} : vector<128x128xbf16>, vector<128x64xbf16>, vector<128x64xf32> -> vector<128x64xf32>
    %c0_20 = arith.constant 0 : index
    %c0_21 = arith.constant 0 : index
    %25 = vector.load %arg7[%c0_20, %c0_21] : memref<1x64xf32, #tpu.memory_space<vmem>>, vector<1x64xf32>
    %26 = vector.broadcast %25 : vector<1x64xf32> to vector<128x64xf32>
    %27 = arith.addf %24, %26 : vector<128x64xf32>
    %cst_22 = arith.constant 0.000000e+00 : f32
    %28 = vector.broadcast %cst_22 : f32 to vector<128x64xf32>
    %29 = arith.maximumf %27, %28 : vector<128x64xf32>
    %c0_23 = arith.constant 0 : index
    %c0_24 = arith.constant 0 : index
    %30 = vector.load %arg8[%c0_23, %c0_24] : memref<8x128xf32, #tpu.memory_space<vmem>>, vector<8x128xf32>
    %cst_25 = arith.constant dense<0.000000e+00> : vector<8x64xf32>
    %31 = tpu.matmul %30, %29, %cst_25 {dimension_numbers = #tpu.dot_dimension_numbers<[1], [0], [0], [1], [0, 0, 1, 1], [], []>} : vector<8x128xf32>, vector<128x64xf32>, vector<8x64xf32> -> vector<8x64xf32>
    %c0_26 = arith.constant 0 : index
    %c0_27 = arith.constant 0 : index
    %32 = vector.load %arg9[%c0_26, %c0_27] : memref<64x1xf32, #tpu.memory_space<vmem>>, vector<64x1xf32>
    %cst_28 = arith.constant dense<0.000000e+00> : vector<8x1xf32>
    %33 = tpu.matmul %31, %32, %cst_28 {dimension_numbers = #tpu.dot_dimension_numbers<[1], [0], [0], [1], [0, 0, 1, 1], [], []>} : vector<8x64xf32>, vector<64x1xf32>, vector<8x1xf32> -> vector<8x1xf32>
    %c0_29 = arith.constant 0 : index
    %c0_30 = arith.constant 0 : index
    %34 = vector.load %arg10[%c0_29, %c0_30] : memref<1x1xf32, #tpu.memory_space<vmem>>, vector<1x1xf32>
    %35 = vector.broadcast %34 : vector<1x1xf32> to vector<8x1xf32>
    %36 = arith.addf %33, %35 : vector<8x1xf32>
    %c0_31 = arith.constant 0 : index
    %c0_32 = arith.constant 0 : index
    %37 = vector.load %arg11[%c0_31, %c0_32] : memref<8x1xf32, #tpu.memory_space<vmem>>, vector<8x1xf32>
    tpu.vector_store %arg11[%c0_31, %c0_32], %36 {strides = array<i32>} : memref<8x1xf32, #tpu.memory_space<vmem>>, vector<8x1xf32>,
    return
  }
}

</mosaic_0001>

<bundles_post_ra>
// kernel: tpu_custom_call.1
= control target key start
LH: loop header
LB: loop body
LE: loop exit
PB: predicated region body
PF: predicated region fallthrough
CT: control target
= control target key end

     0   :  { %vm82_vm0 = vcmask 130048   ;;  %vm281_vm1 = vcmask 523264   ;;  %vm686_vm2 = vcmask 7168   ;;  %s1115_s2 = inlined_call_operand.vmem [shape: f32[16,64], index: 2, kind: input, shape index: {}]   ;;  %s1116_s1 = inlined_call_operand.vmem [shape: f32[128,16], index: 1, kind: input, shape index: {}]   ;;  %s1117_s3 = inlined_call_operand.vmem [shape: f32[1,64], index: 3, kind: input, shape index: {}]   ;;  %s1118_s0 = inlined_call_operand.vmem [shape: f32[128,128], index: 0, kind: input, shape index: {}]   ;;  %s1119_s4 = inlined_call_operand.vmem [shape: f32[64,128], index: 4, kind: input, shape index: {}]   ;;  %s1120_s5 = inlined_call_operand.vmem [shape: f32[1,128], index: 5, kind: input, shape index: {}]   ;;  %s1121_s6 = inlined_call_operand.vmem [shape: f32[128,64], index: 6, kind: input, shape index: {}]   ;;  %s1122_s7 = inlined_call_operand.vmem [shape: f32[1,64], index: 7, kind: input, shape index: {}]   ;;  %s1123_s9 = inlined_call_operand.vmem [shape: f32[64,1], index: 9, kind: input, shape index: {}]   ;;  %s1124_s8 = inlined_call_operand.vmem [shape: f32[8,128], index: 8, kind: input, shape index: {}]   ;;  %s1125_s10 = inlined_call_operand.<no memory space> [shape: f32[1,1], index: 10, kind: input, shape index: {}]   ;;  %s1126_s11 = inlined_call_operand.vmem [shape: f32[8,1], index: 11, kind: output, shape index: {}]  }
   0x1   :  { %v81_v0 = vld [vmem:[%s1115_s2 + $0x8] sm:$0xff]  ;;  %v80_v1 = vld [vmem:[%s1115_s2] sm:$0xff]  ;;  %v74_v3 = vld [vmem:[%s1116_s1 + $0x50] sm:$0xff] }
   0x2   :  { %145 = vmatpush.msra.mxu0 %v81_v0  ;;  %725 = vmatpush.msra.mxu3 %v81_v0  ;;  %v64_v2 = vld [vmem:[%s1116_s1] sm:$0xff]  ;;  %v65_v4 = vld [vmem:[%s1116_s1 + $0x8] sm:$0xff]  ;;  %v75_v5 = vld [vmem:[%s1116_s1 + $0x58] sm:$0xff] }
   0x3   :  { %v66_v6 = vld [vmem:[%s1116_s1 + $0x10] sm:$0xff]  ;;  %v76_v7 = vld [vmem:[%s1116_s1 + $0x60] sm:$0xff]  ;;  %v67_v8 = vld [vmem:[%s1116_s1 + $0x18] sm:$0xff] }
   0x4   :  { %146 = vmatpush.msra.mxu0 %v80_v1  ;;  %726 = vmatpush.msra.mxu3 %v80_v1  ;;  %v77_v9 = vld [vmem:[%s1116_s1 + $0x68] sm:$0xff]  ;;  %v68_v10 = vld [vmem:[%s1116_s1 + $0x20] sm:$0xff]  ;;  %v78_v11 = vld [vmem:[%s1116_s1 + $0x70] sm:$0xff] }
   0x5   :  { %692 = vmatmul.msk.f32.vlgmr.msra.gmra.mxu0 %vm82_vm0, %v64_v2  ;;  %702 = vmatmul.msk.f32.vlgmr.msra.gmra.mxu3 %vm82_vm0, %v74_v3  ;;  %v69_v12 = vld [vmem:[%s1116_s1 + $0x28] sm:$0xff]  ;;  %v79_v13 = vld [vmem:[%s1116_s1 + $0x78] sm:$0xff]  ;;  %v70_v14 = vld [vmem:[%s1116_s1 + $0x30] sm:$0xff] }
   0x6   :  { %v71_v15 = vld [vmem:[%s1116_s1 + $0x38] sm:$0xff]  ;;  %v72_v16 = vld [vmem:[%s1116_s1 + $0x40] sm:$0xff]  ;;  %v73_v17 = vld [vmem:[%s1116_s1 + $0x48] sm:$0xff] }
   0x7   :  { %v40_v41 = vld [vmem:[%s1118_s0] sm:$0xff]  ;;  %v41_v42 = vld [vmem:[%s1118_s0 + $0x8] sm:$0xff]  ;;  %v42_v45 = vld [vmem:[%s1118_s0 + $0x10] sm:$0xff] }
   0x8   :  { %v875_v44 = vpack.c.bf16 %v41_v42, %v40_v41  ;;  %v43_v46 = vld [vmem:[%s1118_s0 + $0x18] sm:$0xff]  ;;  %v44_v48 = vld [vmem:[%s1118_s0 + $0x20] sm:$0xff]  ;;  %v45_v49 = vld [vmem:[%s1118_s0 + $0x28] sm:$0xff] }
   0x9   :  { %v884_v47 = vpack.c.bf16 %v43_v46, %v42_v45  ;;  %v893_v50 = vpack.c.bf16 %v45_v49, %v44_v48  ;;  %v46_v51 = vld [vmem:[%s1118_s0 + $0x30] sm:$0xff]  ;;  %v47_v52 = vld [vmem:[%s1118_s0 + $0x38] sm:$0xff]  ;;  %v48_v54 = vld [vmem:[%s1118_s0 + $0x40] sm:$0xff] }
   0xa   :  { %v902_v53 = vpack.c.bf16 %v47_v52, %v46_v51  ;;  %v49_v55 = vld [vmem:[%s1118_s0 + $0x48] sm:$0xff]  ;;  %v50_v57 = vld [vmem:[%s1118_s0 + $0x50] sm:$0xff]  ;;  %v51_v58 = vld [vmem:[%s1118_s0 + $0x58] sm:$0xff] }
   0xb   :  { %v911_v56 = vpack.c.bf16 %v49_v55, %v48_v54  ;;  %v920_v59 = vpack.c.bf16 %v51_v58, %v50_v57  ;;  %v280_v60 = vld [vmem:[%s1119_s4 + $0x38] sm:$0xff]  ;;  %v279_v61 = vld [vmem:[%s1119_s4 + $0x30] sm:$0xff]  ;;  %v278_v62 = vld [vmem:[%s1119_s4 + $0x28] sm:$0xff] }
   0xc   :  { %727 = vmatpush.msra.mxu2 %v280_v60  ;;  %v277_v63 = vld [vmem:[%s1119_s4 + $0x20] sm:$0xff]  ;;  %v276_v0 = vld [vmem:[%s1119_s4 + $0x18] sm:$0xff]  ;;  %v53_v2 = vld [vmem:[%s1118_s0 + $0x68] sm:$0xff] }
   0xd   :  { %693 = vmatmul.msk.f32.gmra.mxu0 %vm82_vm0, %v65_v4  ;;  %703 = vmatmul.msk.f32.gmra.mxu3 %vm82_vm0, %v75_v5  ;;  %v52_v1 = vld [vmem:[%s1118_s0 + $0x60] sm:$0xff]  ;;  %v275_v4 = vld [vmem:[%s1119_s4 + $0x10] sm:$0xff]  ;;  %v274_v5 = vld [vmem:[%s1119_s4 + $0x8] sm:$0xff] }
   0xe   :  { %728 = vmatpush.msra.mxu2 %v279_v61  ;;  %v944_v3 = vpack.c.bf16 %v53_v2, %v52_v1 }
  0x10   :  { %729 = vmatpush.msra.mxu2 %v278_v62 }
  0x12   :  { %730 = vmatpush.msra.mxu2 %v277_v63 }
  0x14   :  { %731 = vmatpush.msra.mxu2 %v276_v0 }
  0x15   :  { %694 = vmatmul.msk.f32.gmra.mxu0 %vm82_vm0, %v66_v6  ;;  %704 = vmatmul.msk.f32.gmra.mxu3 %vm82_vm0, %v76_v7  ;;  %v273_v6 = vld [vmem:[%s1119_s4] sm:$0xff]  ;;  %v54_v7 = vld [vmem:[%s1118_s0 + $0x70] sm:$0xff] }
  0x16   :  { %732 = vmatpush.msra.mxu2 %v275_v4 }
  0x18   :  { %733 = vmatpush.msra.mxu2 %v274_v5 }
  0x1a   :  { %734 = vmatpush.msra.mxu2 %v273_v6 }
  0x1d   :  { %695 = vmatmul.msk.f32.gmra.mxu0 %vm82_vm0, %v67_v8  ;;  %705 = vmatmul.msk.f32.gmra.mxu3 %vm82_vm0, %v77_v9  ;;  %v55_v8 = vld [vmem:[%s1118_s0 + $0x78] sm:$0xff] }
  0x1e   :  { %v962_v9 = vpack.c.bf16 %v55_v8, %v54_v7 }
  0x25   :  { %696 = vmatmul.msk.f32.gmra.mxu0 %vm82_vm0, %v68_v10  ;;  %706 = vmatmul.msk.f32.gmra.mxu3 %vm82_vm0, %v78_v11  ;;  %v968_v10 = vld [vmem:[%s1117_s3] ss:$0 sm:$0xff] }
  0x2d   :  { %697 = vmatmul.msk.f32.gmra.mxu0 %vm82_vm0, %v69_v12  ;;  %707 = vmatmul.msk.f32.gmra.mxu3 %vm82_vm0, %v79_v13 }
  0x35   :  { %698 = vmatmul.msk.f32.gmra.mxu0 %vm82_vm0, %v70_v14 }
  0x3d   :  { %699 = vmatmul.msk.f32.gmra.mxu0 %vm82_vm0, %v71_v15 }
  0x45   :  { %700 = vmatmul.msk.f32.gmra.mxu0 %vm82_vm0, %v72_v16 }
  0x4d   :  { %701 = vmatmul.msk.f32.gmra.mxu0 %vm82_vm0, %v73_v17 }
  0x82   :  { %v148_v18 = vpop.f32.mrf.mxu0 }
  0x88   :  { %v178_v19 = vpop.f32.mrf.mxu3 }
  0x8a   :  { %v151_v20 = vpop.f32.mrf.mxu0 }
  0x8b   :  { %v196_v43 = vpack.c.bf16 %v151_v20, %v148_v18 }
  0x90   :  { %v181_v21 = vpop.f32.mrf.mxu3 }
  0x91   :  { %v201_v33 = vpack.c.bf16 %v181_v21, %v178_v19 }
  0x92   :  { %v154_v22 = vpop.f32.mrf.mxu0 }
  0x98   :  { %v184_v23 = vpop.f32.mrf.mxu3 }
  0x9a   :  { %v157_v24 = vpop.f32.mrf.mxu0 }
  0x9b   :  { %v197_v40 = vpack.c.bf16 %v157_v24, %v154_v22 }
  0xa0   :  { %v187_v25 = vpop.f32.mrf.mxu3 }
  0xa1   :  { %v202_v32 = vpack.c.bf16 %v187_v25, %v184_v23 }
  0xa2   :  { %v160_v26 = vpop.f32.mrf.mxu0 }
  0xa8   :  { %v190_v27 = vpop.f32.mrf.mxu3 }
  0xaa   :  { %v163_v28 = vpop.f32.mrf.mxu0 }
  0xab   :  { %v198_v39 = vpack.c.bf16 %v163_v28, %v160_v26 }
  0xb0   :  { %v193_v29 = vpop.f32.mrf.mxu3 }
  0xb1   :  { %v203_v30 = vpack.c.bf16 %v193_v29, %v190_v27 }
  0xb2   :  { %v166_v31 = vpop.f32.mrf.mxu0 }
  0xb3   :  { %208 = vmatpush.bf16.msra.mxu1 %v203_v30 }
  0xb7   :  { %209 = vmatpush.bf16.msra.mxu1 %v202_v32 }
  0xba   :  { %v169_v34 = vpop.f32.mrf.mxu0 }
  0xbb   :  { %210 = vmatpush.bf16.msra.mxu1 %v201_v33  ;;  %v199_v38 = vpack.c.bf16 %v169_v34, %v166_v31 }
  0xc2   :  { %v172_v35 = vpop.f32.mrf.mxu0 }
  0xca   :  { %v175_v36 = vpop.f32.mrf.mxu0 }
  0xcb   :  { %v200_v37 = vpack.c.bf16 %v175_v36, %v172_v35 }
  0xcd   :  { %211 = vmatpush.bf16.msra.mxu1 %v200_v37 }
  0xd1   :  { %212 = vmatpush.bf16.msra.mxu1 %v199_v38 }
  0xd5   :  { %213 = vmatpush.bf16.msra.mxu1 %v198_v39 }
  0xd9   :  { %214 = vmatpush.bf16.msra.mxu1 %v197_v40 }
  0xdd   :  { %215 = vmatpush.bf16.msra.mxu1 %v196_v43 }
  0xe0   :  { %216 = vmatmul.bf16.vlgmr.msra.gmra.mxu1 %v875_v44 }
  0xe1   :  { %338 = vmatpush.msrb.mxu1 %v280_v60 }
  0xe3   :  { %339 = vmatpush.msrb.mxu1 %v279_v61 }
  0xe5   :  { %340 = vmatpush.msrb.mxu1 %v278_v62 }
  0xe7   :  { %341 = vmatpush.msrb.mxu1 %v277_v63 }
  0xe9   :  { %342 = vmatpush.msrb.mxu1 %v276_v0 }
  0xeb   :  { %343 = vmatpush.msrb.mxu1 %v275_v4 }
  0xed   :  { %344 = vmatpush.msrb.mxu1 %v274_v5 }
  0xef   :  { %345 = vmatpush.msrb.mxu1 %v273_v6 }
  0xf0   :  { %221 = vmatmul.bf16.gmra.mxu1 %v884_v47 }
 0x100   :  { %226 = vmatmul.bf16.gmra.mxu1 %v893_v50 }
 0x110   :  { %231 = vmatmul.bf16.gmra.mxu1 %v902_v53 }
 0x120   :  { %236 = vmatmul.bf16.gmra.mxu1 %v911_v56 }
 0x130   :  { %241 = vmatmul.bf16.gmra.mxu1 %v920_v59 }
 0x140   :  { %246 = vmatmul.bf16.gmra.mxu1 %v944_v3 }
 0x150   :  { %251 = vmatmul.bf16.gmra.mxu1 %v962_v9 }
 0x15d   :  { %v217_v11 = vpop.f32.mrf.mxu1 }
 0x15e   :  { %v218_v12 = vadd.f32 %v968_v10, %v217_v11 }
 0x160   :  { %v257_v13 = vmax.f32 %v218_v12, 0.0 }
 0x162   :  { %708 = vmatmul.msk.f32.vlgmr.msrb.gmra.mxu1 %vm281_vm1, %v257_v13 }
 0x165   :  { %v219_v14 = vpop.f32.mrf.mxu1 }
 0x166   :  { %v220_v15 = vadd.f32 %v968_v10, %v219_v14 }
 0x168   :  { %v258_v16 = vmax.f32 %v220_v15, 0.0 }
 0x16a   :  { %709 = vmatmul.msk.f32.gmra.mxu1 %vm281_vm1, %v258_v16 }
 0x16d   :  { %v222_v17 = vpop.f32.mrf.mxu1 }
 0x16e   :  { %v223_v18 = vadd.f32 %v968_v10, %v222_v17 }
 0x170   :  { %v259_v19 = vmax.f32 %v223_v18, 0.0 }
 0x172   :  { %710 = vmatmul.msk.f32.gmra.mxu1 %vm281_vm1, %v259_v19 }
 0x175   :  { %v224_v20 = vpop.f32.mrf.mxu1 }
 0x176   :  { %v225_v21 = vadd.f32 %v968_v10, %v224_v20 }
 0x178   :  { %v260_v22 = vmax.f32 %v225_v21, 0.0 }
 0x17a   :  { %711 = vmatmul.msk.f32.gmra.mxu1 %vm281_vm1, %v260_v22 }
 0x17d   :  { %v227_v23 = vpop.f32.mrf.mxu1 }
 0x17e   :  { %v228_v24 = vadd.f32 %v968_v10, %v227_v23 }
 0x180   :  { %v261_v25 = vmax.f32 %v228_v24, 0.0 }
 0x182   :  { %712 = vmatmul.msk.f32.gmra.mxu1 %vm281_vm1, %v261_v25 }
 0x185   :  { %v229_v26 = vpop.f32.mrf.mxu1 }
 0x186   :  { %v230_v27 = vadd.f32 %v968_v10, %v229_v26 }
 0x188   :  { %v262_v28 = vmax.f32 %v230_v27, 0.0  ;;  %v487_v27 = vld [vmem:[%s1121_s6 + $0x78] sm:$0xff] }
 0x189   :  { %488 = vmatpush.msrb.mxu0 %v487_v27 }
 0x18a   :  { %713 = vmatmul.msk.f32.gmra.mxu1 %vm281_vm1, %v262_v28  ;;  %v486_v28 = vld [vmem:[%s1121_s6 + $0x70] sm:$0xff] }
 0x18b   :  { %489 = vmatpush.msrb.mxu0 %v486_v28 }
 0x18d   :  { %v232_v29 = vpop.f32.mrf.mxu1 }
 0x18e   :  { %v233_v30 = vadd.f32 %v968_v10, %v232_v29  ;;  %v485_v29 = vld [vmem:[%s1121_s6 + $0x68] sm:$0xff] }
 0x18f   :  { %490 = vmatpush.msrb.mxu0 %v485_v29 }
 0x190   :  { %v263_v31 = vmax.f32 %v233_v30, 0.0  ;;  %v484_v30 = vld [vmem:[%s1121_s6 + $0x60] sm:$0xff] }
 0x191   :  { %491 = vmatpush.msrb.mxu0 %v484_v30 }
 0x192   :  { %714 = vmatmul.msk.f32.vlgmr.msra.gmra.mxu2 %vm281_vm1, %v263_v31  ;;  %v483_v31 = vld [vmem:[%s1121_s6 + $0x58] sm:$0xff] }
 0x193   :  { %492 = vmatpush.msrb.mxu0 %v483_v31 }
 0x195   :  { %v234_v32 = vpop.f32.mrf.mxu1 }
 0x196   :  { %v235_v33 = vadd.f32 %v968_v10, %v234_v32  ;;  %v482_v32 = vld [vmem:[%s1121_s6 + $0x50] sm:$0xff] }
 0x197   :  { %493 = vmatpush.msrb.mxu0 %v482_v32 }
 0x198   :  { %v264_v34 = vmax.f32 %v235_v33, 0.0  ;;  %v481_v33 = vld [vmem:[%s1121_s6 + $0x48] sm:$0xff] }
 0x199   :  { %494 = vmatpush.msrb.mxu0 %v481_v33 }
 0x19a   :  { %715 = vmatmul.msk.f32.gmra.mxu2 %vm281_vm1, %v264_v34  ;;  %v480_v34 = vld [vmem:[%s1121_s6 + $0x40] sm:$0xff] }
 0x19b   :  { %495 = vmatpush.msrb.mxu0 %v480_v34 }
 0x19d   :  { %v237_v35 = vpop.f32.mrf.mxu1 }
 0x19e   :  { %v238_v36 = vadd.f32 %v968_v10, %v237_v35  ;;  %v479_v35 = vld [vmem:[%s1121_s6 + $0x38] sm:$0xff] }
 0x19f   :  { %496 = vmatpush.msrb.mxu0 %v479_v35 }
 0x1a0   :  { %v265_v37 = vmax.f32 %v238_v36, 0.0  ;;  %v478_v36 = vld [vmem:[%s1121_s6 + $0x30] sm:$0xff] }
 0x1a1   :  { %497 = vmatpush.msrb.mxu0 %v478_v36 }
 0x1a2   :  { %716 = vmatmul.msk.f32.gmra.mxu2 %vm281_vm1, %v265_v37  ;;  %v477_v37 = vld [vmem:[%s1121_s6 + $0x28] sm:$0xff] }
 0x1a3   :  { %498 = vmatpush.msrb.mxu0 %v477_v37 }
 0x1a5   :  { %v239_v38 = vpop.f32.mrf.mxu1 }
 0x1a6   :  { %v240_v39 = vadd.f32 %v968_v10, %v239_v38  ;;  %v476_v38 = vld [vmem:[%s1121_s6 + $0x20] sm:$0xff] }
 0x1a7   :  { %499 = vmatpush.msrb.mxu0 %v476_v38 }
 0x1a8   :  { %v266_v40 = vmax.f32 %v240_v39, 0.0  ;;  %v475_v39 = vld [vmem:[%s1121_s6 + $0x18] sm:$0xff] }
 0x1a9   :  { %500 = vmatpush.msrb.mxu0 %v475_v39 }
 0x1aa   :  { %717 = vmatmul.msk.f32.gmra.mxu2 %vm281_vm1, %v266_v40  ;;  %v474_v40 = vld [vmem:[%s1121_s6 + $0x10] sm:$0xff] }
 0x1ab   :  { %501 = vmatpush.msrb.mxu0 %v474_v40 }
 0x1ad   :  { %v242_v41 = vpop.f32.mrf.mxu1 }
 0x1ae   :  { %v243_v42 = vadd.f32 %v968_v10, %v242_v41  ;;  %v473_v41 = vld [vmem:[%s1121_s6 + $0x8] sm:$0xff] }
 0x1af   :  { %502 = vmatpush.msrb.mxu0 %v473_v41 }
 0x1b0   :  { %v267_v43 = vmax.f32 %v243_v42, 0.0  ;;  %v472_v42 = vld [vmem:[%s1121_s6] sm:$0xff] }
 0x1b1   :  { %503 = vmatpush.msrb.mxu0 %v472_v42 }
 0x1b2   :  { %718 = vmatmul.msk.f32.gmra.mxu2 %vm281_vm1, %v267_v43  ;;  %v736_v43 = vld [vmem:[%s1120_s5] ss:$0 sm:$0xff] }
 0x1b5   :  { %v244_v45 = vpop.f32.mrf.mxu1 }
 0x1b6   :  { %v245_v46 = vadd.f32 %v968_v10, %v244_v45 }
 0x1b8   :  { %v268_v48 = vmax.f32 %v245_v46, 0.0 }
 0x1ba   :  { %719 = vmatmul.msk.f32.gmra.mxu2 %vm281_vm1, %v268_v48 }
 0x1bd   :  { %v247_v49 = vpop.f32.mrf.mxu1 }
 0x1be   :  { %v248_v51 = vadd.f32 %v968_v10, %v247_v49 }
 0x1c0   :  { %v269_v52 = vmax.f32 %v248_v51, 0.0 }
 0x1c2   :  { %720 = vmatmul.msk.f32.gmra.mxu2 %vm281_vm1, %v269_v52 }
 0x1c5   :  { %v249_v54 = vpop.f32.mrf.mxu1 }
 0x1c6   :  { %v250_v55 = vadd.f32 %v968_v10, %v249_v54 }
 0x1c8   :  { %v270_v57 = vmax.f32 %v250_v55, 0.0 }
 0x1ca   :  { %721 = vmatmul.msk.f32.gmra.mxu2 %vm281_vm1, %v270_v57 }
 0x1cd   :  { %v252_v58 = vpop.f32.mrf.mxu1 }
 0x1ce   :  { %v253_v60 = vadd.f32 %v968_v10, %v252_v58 }
 0x1d0   :  { %v271_v61 = vmax.f32 %v253_v60, 0.0 }
 0x1d2   :  { %722 = vmatmul.msk.f32.gmra.mxu2 %vm281_vm1, %v271_v61 }
 0x1d5   :  { %v254_v62 = vpop.f32.mrf.mxu1 }
 0x1d6   :  { %v255_v63 = vadd.f32 %v968_v10, %v254_v62 }
 0x1d8   :  { %v272_v0 = vmax.f32 %v255_v63, 0.0 }
 0x1da   :  { %723 = vmatmul.msk.f32.gmra.mxu2 %vm281_vm1, %v272_v0 }
 0x1df   :  { %v347_v7 = vpop.f32.mrf.mxu1 }
 0x1e7   :  { %v350_v12 = vpop.f32.mrf.mxu1 }
 0x1e8   :  { %v395_v26 = vpack.c.bf16 %v350_v12, %v347_v7 }
 0x1ef   :  { %v353_v14 = vpop.f32.mrf.mxu1 }
 0x1f7   :  { %v356_v16 = vpop.f32.mrf.mxu1 }
 0x1f8   :  { %v396_v25 = vpack.c.bf16 %v356_v16, %v353_v14 }
 0x1ff   :  { %v359_v19 = vpop.f32.mrf.mxu1 }
 0x207   :  { %v362_v23 = vpop.f32.mrf.mxu1 }
 0x208   :  { %v397_v24 = vpack.c.bf16 %v362_v23, %v359_v19 }
 0x215   :  { %v365_v1 = vpop.f32.mrf.mxu2 }
 0x21d   :  { %v368_v2 = vpop.f32.mrf.mxu2 }
 0x21e   :  { %v398_v22 = vpack.c.bf16 %v368_v2, %v365_v1 }
 0x225   :  { %v371_v4 = vpop.f32.mrf.mxu2 }
 0x22d   :  { %v374_v5 = vpop.f32.mrf.mxu2 }
 0x22e   :  { %v399_v21 = vpack.c.bf16 %v374_v5, %v371_v4 }
 0x235   :  { %v377_v6 = vpop.f32.mrf.mxu2 }
 0x23d   :  { %v380_v8 = vpop.f32.mrf.mxu2 }
 0x23e   :  { %v400_v20 = vpack.c.bf16 %v380_v8, %v377_v6 }
 0x245   :  { %v383_v11 = vpop.f32.mrf.mxu2 }
 0x24d   :  { %v386_v13 = vpop.f32.mrf.mxu2 }
 0x24e   :  { %v401_v10 = vpack.c.bf16 %v386_v13, %v383_v11 }
 0x255   :  { %v389_v15 = vpop.f32.mrf.mxu2 }
 0x25d   :  { %v392_v17 = vpop.f32.mrf.mxu2 }
 0x25e   :  { %v402_v18 = vpack.c.bf16 %v392_v17, %v389_v15 }
 0x260   :  { %407 = vmatpush.bf16.msrb.mxu3 %v402_v18 }
 0x264   :  { %408 = vmatpush.bf16.msrb.mxu3 %v401_v10 }
 0x268   :  { %409 = vmatpush.bf16.msrb.mxu3 %v400_v20 }
 0x26c   :  { %410 = vmatpush.bf16.msrb.mxu3 %v399_v21 }
 0x270   :  { %411 = vmatpush.bf16.msrb.mxu3 %v398_v22 }
 0x274   :  { %412 = vmatpush.bf16.msrb.mxu3 %v397_v24 }
 0x278   :  { %413 = vmatpush.bf16.msrb.mxu3 %v396_v25 }
 0x27c   :  { %414 = vmatpush.bf16.msrb.mxu3 %v395_v26 }
 0x27f   :  { %415 = vmatmul.bf16.vlgmr.msrb.gmra.mxu3 %v875_v44 }
 0x28f   :  { %420 = vmatmul.bf16.gmra.mxu3 %v884_v47 }
 0x29f   :  { %425 = vmatmul.bf16.gmra.mxu3 %v893_v50 }
 0x2af   :  { %430 = vmatmul.bf16.gmra.mxu3 %v902_v53 }
 0x2bf   :  { %435 = vmatmul.bf16.gmra.mxu3 %v911_v56 }
 0x2cf   :  { %440 = vmatmul.bf16.gmra.mxu3 %v920_v59 }
 0x2df   :  { %445 = vmatmul.bf16.gmra.mxu3 %v944_v3 }
 0x2ef   :  { %450 = vmatmul.bf16.gmra.mxu3 %v962_v9 }
 0x302   :  { %v416_v45 = vpop.f32.mrf.mxu3 }
 0x303   :  { %v417_v46 = vadd.f32 %v736_v43, %v416_v45 }
 0x305   :  { %v456_v48 = vmax.f32 %v417_v46, 0.0 }
 0x307   :  { %504 = vmatmul.f32.vlgmr.msrb.gmra.mxu0 %v456_v48 }
 0x30a   :  { %v418_v49 = vpop.f32.mrf.mxu3 }
 0x30b   :  { %v419_v51 = vadd.f32 %v736_v43, %v418_v49 }
 0x30d   :  { %v457_v52 = vmax.f32 %v419_v51, 0.0 }
 0x30f   :  { %507 = vmatmul.f32.gmra.mxu0 %v457_v52 }
 0x312   :  { %v421_v54 = vpop.f32.mrf.mxu3 }
 0x313   :  { %v422_v55 = vadd.f32 %v736_v43, %v421_v54 }
 0x315   :  { %v458_v57 = vmax.f32 %v422_v55, 0.0 }
 0x317   :  { %510 = vmatmul.f32.gmra.mxu0 %v458_v57 }
 0x31a   :  { %v423_v58 = vpop.f32.mrf.mxu3 }
 0x31b   :  { %v424_v60 = vadd.f32 %v736_v43, %v423_v58 }
 0x31d   :  { %v459_v61 = vmax.f32 %v424_v60, 0.0 }
 0x31f   :  { %513 = vmatmul.f32.gmra.mxu0 %v459_v61 }
 0x322   :  { %v426_v62 = vpop.f32.mrf.mxu3 }
 0x323   :  { %v427_v63 = vadd.f32 %v736_v43, %v426_v62 }
 0x325   :  { %v460_v0 = vmax.f32 %v427_v63, 0.0 }
 0x327   :  { %516 = vmatmul.f32.gmra.mxu0 %v460_v0 }
 0x32a   :  { %v428_v1 = vpop.f32.mrf.mxu3 }
 0x32b   :  { %v429_v2 = vadd.f32 %v736_v43, %v428_v1 }
 0x32d   :  { %v461_v4 = vmax.f32 %v429_v2, 0.0 }
 0x32f   :  { %519 = vmatmul.f32.gmra.mxu0 %v461_v4 }
 0x332   :  { %v431_v5 = vpop.f32.mrf.mxu3 }
 0x333   :  { %v432_v6 = vadd.f32 %v736_v43, %v431_v5 }
 0x335   :  { %v462_v7 = vmax.f32 %v432_v6, 0.0 }
 0x337   :  { %522 = vmatmul.f32.gmra.mxu0 %v462_v7 }
 0x33a   :  { %v433_v8 = vpop.f32.mrf.mxu3 }
 0x33b   :  { %v434_v11 = vadd.f32 %v736_v43, %v433_v8 }
 0x33d   :  { %v463_v12 = vmax.f32 %v434_v11, 0.0 }
 0x33f   :  { %525 = vmatmul.f32.gmra.mxu0 %v463_v12 }
 0x342   :  { %v436_v13 = vpop.f32.mrf.mxu3 }
 0x343   :  { %v437_v14 = vadd.f32 %v736_v43, %v436_v13 }
 0x345   :  { %v464_v15 = vmax.f32 %v437_v14, 0.0 }
 0x347   :  { %528 = vmatmul.f32.gmra.mxu0 %v464_v15 }
 0x34a   :  { %v438_v16 = vpop.f32.mrf.mxu3 }
 0x34b   :  { %v439_v17 = vadd.f32 %v736_v43, %v438_v16 }
 0x34d   :  { %v465_v18 = vmax.f32 %v439_v17, 0.0 }
 0x34f   :  { %531 = vmatmul.f32.gmra.mxu0 %v465_v18  ;;  %v658_v18 = vld [vmem:[%s1123_s9 + $0x38] sm:$0xff] }
 0x350   :  { %674 = vmatpush.msra.mxu3 %v658_v18 }
 0x352   :  { %v441_v10 = vpop.f32.mrf.mxu3 }
 0x353   :  { %v442_v19 = vadd.f32 %v736_v43, %v441_v10  ;;  %v657_v10 = vld [vmem:[%s1123_s9 + $0x30] sm:$0xff] }
 0x354   :  { %675 = vmatpush.msra.mxu3 %v657_v10 }
 0x355   :  { %v466_v20 = vmax.f32 %v442_v19, 0.0 }
 0x357   :  { %534 = vmatmul.f32.gmra.mxu0 %v466_v20 }
 0x35a   :  { %v443_v21 = vpop.f32.mrf.mxu3 }
 0x35b   :  { %v444_v22 = vadd.f32 %v736_v43, %v443_v21  ;;  %v656_v21 = vld [vmem:[%s1123_s9 + $0x28] sm:$0xff] }
 0x35c   :  { %676 = vmatpush.msra.mxu3 %v656_v21 }
 0x35d   :  { %v467_v23 = vmax.f32 %v444_v22, 0.0 }
 0x35f   :  { %537 = vmatmul.f32.gmra.mxu0 %v467_v23 }
 0x362   :  { %v446_v24 = vpop.f32.mrf.mxu3 }
 0x363   :  { %v447_v25 = vadd.f32 %v736_v43, %v446_v24  ;;  %v655_v24 = vld [vmem:[%s1123_s9 + $0x20] sm:$0xff] }
 0x364   :  { %677 = vmatpush.msra.mxu3 %v655_v24 }
 0x365   :  { %v468_v26 = vmax.f32 %v447_v25, 0.0 }
 0x367   :  { %540 = vmatmul.f32.gmra.mxu0 %v468_v26 }
 0x36a   :  { %v448_v27 = vpop.f32.mrf.mxu3 }
 0x36b   :  { %v449_v28 = vadd.f32 %v736_v43, %v448_v27  ;;  %v654_v27 = vld [vmem:[%s1123_s9 + $0x18] sm:$0xff] }
 0x36c   :  { %678 = vmatpush.msra.mxu3 %v654_v27 }
 0x36d   :  { %v469_v29 = vmax.f32 %v449_v28, 0.0 }
 0x36f   :  { %543 = vmatmul.f32.gmra.mxu0 %v469_v29 }
 0x372   :  { %v451_v30 = vpop.f32.mrf.mxu3 }
 0x373   :  { %v452_v31 = vadd.f32 %v736_v43, %v451_v30  ;;  %v653_v30 = vld [vmem:[%s1123_s9 + $0x10] sm:$0xff] }
 0x374   :  { %679 = vmatpush.msra.mxu3 %v653_v30 }
 0x375   :  { %v470_v32 = vmax.f32 %v452_v31, 0.0 }
 0x377   :  { %546 = vmatmul.f32.gmra.mxu0 %v470_v32 }
 0x37a   :  { %v453_v33 = vpop.f32.mrf.mxu3 }
 0x37b   :  { %v454_v34 = vadd.f32 %v736_v43, %v453_v33  ;;  %v652_v33 = vld [vmem:[%s1123_s9 + $0x8] sm:$0xff] }
 0x37c   :  { %680 = vmatpush.msra.mxu3 %v652_v33 }
 0x37d   :  { %v471_v35 = vmax.f32 %v454_v34, 0.0 }
 0x37f   :  { %549 = vmatmul.f32.gmra.mxu0 %v471_v35 }
 0x384   :  { %v505_v36 = vpop.f32.mrf.mxu0 }
 0x38c   :  { %v508_v37 = vpop.f32.mrf.mxu0 }
 0x38d   :  { %v553_v38 = vpack.c.bf16 %v508_v37, %v505_v36  ;;  %v651_v36 = vld [vmem:[%s1123_s9] sm:$0xff] }
 0x38e   :  { %681 = vmatpush.msra.mxu3 %v651_v36 }
 0x394   :  { %v511_v39 = vpop.f32.mrf.mxu0 }
 0x39c   :  { %v514_v40 = vpop.f32.mrf.mxu0 }
 0x39d   :  { %v554_v41 = vpack.c.bf16 %v514_v40, %v511_v39 }
 0x3a4   :  { %v517_v42 = vpop.f32.mrf.mxu0 }
 0x3ac   :  { %v520_v45 = vpop.f32.mrf.mxu0 }
 0x3ad   :  { %v555_v46 = vpack.c.bf16 %v520_v45, %v517_v42 }
 0x3b4   :  { %v523_v48 = vpop.f32.mrf.mxu0 }
 0x3bc   :  { %v526_v49 = vpop.f32.mrf.mxu0 }
 0x3bd   :  { %v556_v51 = vpack.c.bf16 %v526_v49, %v523_v48 }
 0x3c4   :  { %v529_v52 = vpop.f32.mrf.mxu0 }
 0x3cc   :  { %v532_v54 = vpop.f32.mrf.mxu0 }
 0x3cd   :  { %v557_v1 = vpack.c.bf16 %v532_v54, %v529_v52 }
 0x3d4   :  { %v535_v55 = vpop.f32.mrf.mxu0 }
 0x3dc   :  { %v538_v57 = vpop.f32.mrf.mxu0 }
 0x3dd   :  { %v558_v0 = vpack.c.bf16 %v538_v57, %v535_v55 }
 0x3e4   :  { %v541_v58 = vpop.f32.mrf.mxu0 }
 0x3ec   :  { %v544_v43 = vpop.f32.mrf.mxu0 }
 0x3ed   :  { %v559_v63 = vpack.c.bf16 %v544_v43, %v541_v58  ;;  %v630_v43 = vld [vmem:[%s1124_s8] sm:$0xff] }
 0x3f4   :  { %v547_v60 = vpop.f32.mrf.mxu0 }
 0x3fc   :  { %v550_v61 = vpop.f32.mrf.mxu0 }
 0x3fd   :  { %v560_v62 = vpack.c.bf16 %v550_v61, %v547_v60  ;;  %v16_v60 = vstv %s1125_s10 }
 0x3fe   :  { %17 = vst [vmem:[#allocation2] sm:$0x1] %v16_v60 }
 0x3ff   :  { %565 = vmatpush.bf16.msrb.mxu2 %v560_v62 }
 0x403   :  { %566 = vmatpush.bf16.msrb.mxu2 %v559_v63 }
 0x405   :  { %v738_v62 = vld [vmem:[#allocation2] ss:$0 sm:$0xff] }
 0x407   :  { %567 = vmatpush.bf16.msrb.mxu2 %v558_v0 }
 0x40b   :  { %568 = vmatpush.bf16.msrb.mxu2 %v557_v1 }
 0x40f   :  { %569 = vmatpush.bf16.msrb.mxu2 %v556_v51 }
 0x413   :  { %570 = vmatpush.bf16.msrb.mxu2 %v555_v46 }
 0x417   :  { %571 = vmatpush.bf16.msrb.mxu2 %v554_v41 }
 0x41b   :  { %572 = vmatpush.bf16.msrb.mxu2 %v553_v38 }
 0x41e   :  { %573 = vmatmul.bf16.vlgmr.msrb.gmra.mxu2 %v875_v44 }
 0x42e   :  { %578 = vmatmul.bf16.gmra.mxu2 %v884_v47 }
 0x43e   :  { %583 = vmatmul.bf16.gmra.mxu2 %v893_v50 }
 0x44e   :  { %588 = vmatmul.bf16.gmra.mxu2 %v902_v53 }
 0x45e   :  { %593 = vmatmul.bf16.gmra.mxu2 %v911_v56 }
 0x46e   :  { %598 = vmatmul.bf16.gmra.mxu2 %v920_v59 }
 0x47e   :  { %603 = vmatmul.bf16.gmra.mxu2 %v944_v3 }
 0x48e   :  { %608 = vmatmul.bf16.gmra.mxu2 %v962_v9  ;;  %v737_v9 = vld [vmem:[%s1122_s7] ss:$0 sm:$0xff] }
 0x4a1   :  { %v1069_v2 = vpop.f32.mrf.mxu2 }
 0x4a2   :  { %v575_v54 = vadd.f32 %v737_v9, %v1069_v2 }
 0x4a4   :  { %v614_v58 = vmax.f32 %v575_v54, 0.0 }
 0x4a9   :  { %v1071_v4 = vpop.f32.mrf.mxu2 }
 0x4aa   :  { %v577_v51 = vadd.f32 %v737_v9, %v1071_v4 }
 0x4ac   :  { %v615_v57 = vmax.f32 %v577_v51, 0.0 }
 0x4b1   :  { %v1073_v5 = vpop.f32.mrf.mxu2 }
 0x4b2   :  { %v580_v48 = vadd.f32 %v737_v9, %v1073_v5 }
 0x4b4   :  { %v616_v55 = vmax.f32 %v580_v48, 0.0 }
 0x4b9   :  { %v581_v44 = vpop.f32.mrf.mxu2 }
 0x4ba   :  { %v582_v45 = vadd.f32 %v737_v9, %v581_v44 }
 0x4bc   :  { %v617_v52 = vmax.f32 %v582_v45, 0.0 }
 0x4c1   :  { %v584_v47 = vpop.f32.mrf.mxu2 }
 0x4c2   :  { %v585_v41 = vadd.f32 %v737_v9, %v584_v47 }
 0x4c4   :  { %v618_v49 = vmax.f32 %v585_v41, 0.0 }
 0x4c9   :  { %v586_v6 = vpop.f32.mrf.mxu2 }
 0x4ca   :  { %v587_v39 = vadd.f32 %v737_v9, %v586_v6 }
 0x4cc   :  { %v619_v46 = vmax.f32 %v587_v39, 0.0 }
 0x4d1   :  { %v589_v50 = vpop.f32.mrf.mxu2 }
 0x4d2   :  { %v590_v37 = vadd.f32 %v737_v9, %v589_v50 }
 0x4d4   :  { %v620_v42 = vmax.f32 %v590_v37, 0.0 }
 0x4d9   :  { %v591_v7 = vpop.f32.mrf.mxu2 }
 0x4da   :  { %v592_v34 = vadd.f32 %v737_v9, %v591_v7 }
 0x4dc   :  { %v621_v40 = vmax.f32 %v592_v34, 0.0 }
 0x4e1   :  { %v594_v53 = vpop.f32.mrf.mxu2 }
 0x4e2   :  { %v595_v31 = vadd.f32 %v737_v9, %v594_v53 }
 0x4e4   :  { %v622_v38 = vmax.f32 %v595_v31, 0.0 }
 0x4e9   :  { %v596_v8 = vpop.f32.mrf.mxu2 }
 0x4ea   :  { %v597_v28 = vadd.f32 %v737_v9, %v596_v8 }
 0x4ec   :  { %v623_v35 = vmax.f32 %v597_v28, 0.0 }
 0x4f1   :  { %v599_v56 = vpop.f32.mrf.mxu2 }
 0x4f2   :  { %v600_v25 = vadd.f32 %v737_v9, %v599_v56 }
 0x4f4   :  { %v624_v32 = vmax.f32 %v600_v25, 0.0 }
 0x4f9   :  { %v601_v11 = vpop.f32.mrf.mxu2 }
 0x4fa   :  { %v602_v22 = vadd.f32 %v737_v9, %v601_v11 }
 0x4fc   :  { %v625_v29 = vmax.f32 %v602_v22, 0.0 }
 0x501   :  { %v604_v59 = vpop.f32.mrf.mxu2 }
 0x502   :  { %v605_v19 = vadd.f32 %v737_v9, %v604_v59 }
 0x504   :  { %v626_v26 = vmax.f32 %v605_v19, 0.0 }
 0x509   :  { %v606_v12 = vpop.f32.mrf.mxu2 }
 0x50a   :  { %v607_v16 = vadd.f32 %v737_v9, %v606_v12 }
 0x50c   :  { %v627_v23 = vmax.f32 %v607_v16, 0.0 }
 0x511   :  { %v609_v3 = vpop.f32.mrf.mxu2 }
 0x512   :  { %v610_v14 = vadd.f32 %v737_v9, %v609_v3 }
 0x514   :  { %v628_v20 = vmax.f32 %v610_v14, 0.0 }
 0x519   :  { %v611_v13 = vpop.f32.mrf.mxu2 }
 0x51a   :  { %v612_v15 = vadd.f32 %v737_v9, %v611_v13 }
 0x51c   :  { %v629_v17 = vmax.f32 %v612_v15, 0.0 }
 0x51e   :  { %631 = vmatpush.msra.mxu1 %v629_v17 }
 0x520   :  { %632 = vmatpush.msra.mxu1 %v628_v20 }
 0x522   :  { %633 = vmatpush.msra.mxu1 %v627_v23 }
 0x524   :  { %634 = vmatpush.msra.mxu1 %v626_v26 }
 0x526   :  { %635 = vmatpush.msra.mxu1 %v625_v29 }
 0x528   :  { %636 = vmatpush.msra.mxu1 %v624_v32 }
 0x52a   :  { %637 = vmatpush.msra.mxu1 %v623_v35 }
 0x52c   :  { %638 = vmatpush.msra.mxu1 %v622_v38 }
 0x52e   :  { %639 = vmatpush.msra.mxu1 %v621_v40 }
 0x530   :  { %640 = vmatpush.msra.mxu1 %v620_v42 }
 0x532   :  { %641 = vmatpush.msra.mxu1 %v619_v46 }
 0x534   :  { %642 = vmatpush.msra.mxu1 %v618_v49 }
 0x536   :  { %643 = vmatpush.msra.mxu1 %v617_v52 }
 0x538   :  { %644 = vmatpush.msra.mxu1 %v616_v55 }
 0x53a   :  { %645 = vmatpush.msra.mxu1 %v615_v57 }
 0x53c   :  { %646 = vmatpush.msra.mxu1 %v614_v58 }
 0x53d   :  { %647 = vmatmul.f32.vlgmr.msra.gmra.mxu1 %v630_v43 }
 0x5ba   :  { %v648_v61 = vpop.f32.mrf.mxu1 }
 0x5bb   :  { %724 = vmatmul.msk.f32.vlgmr.msra.gmra.mxu3 %vm281_vm1, %v648_v61 }
 0x63e   :  { %v683_v63 = vpop.f32.mrf.mxu3 }
 0x63f   :  { %v684_v0 = vadd.f32 %v738_v62, %v683_v63 }
 0x641   :  { %687 = vst.msk [vmem:[%s1126_s11] sm:$0xff] %vm686_vm2, %v684_v0 }

</bundles_post_ra>
